<compile_context>
chip_gen: v7x
topology: tpu7x:2x2x1
jax: 0.10.0
libtpu: 0.0.40
codegen_flags: <defaults>
</compile_context>

<pallas_src>
import functools

import jax
import jax.numpy as jnp
from jax.experimental import pallas as pl
from jax.experimental.pallas import tpu as pltpu


def _round_up(x, m):
    return ((x + m - 1) // m) * m


def _pick_tiles(B, C, bytes_per_elem_pair, vmem_budget=24 * 1024 * 1024):
    """Pick (tile_b, tile_c) so 2x double-buffered input blocks fit the budget."""
    b_pad = _round_up(B, 8)
    c_pad = _round_up(C, 128)
    # Prefer keeping the full class axis in one block (single reduction step).
    tc = c_pad
    tb = vmem_budget // (2 * tc * bytes_per_elem_pair)
    tb = min(b_pad, 1024, (tb // 8) * 8)
    if tb >= 8:
        return int(tb), int(tc)
    # Class axis too wide for even 8 rows: tile classes as well.
    tb = 8
    tc = vmem_budget // (2 * tb * bytes_per_elem_pair)
    tc = min(c_pad, max(128, (tc // 128) * 128))
    return int(tb), int(tc)


def _fbeta_loss_kernel(logits_ref, labels_ref, out_ref,
                       sum_p_ref, sum_l_ref, sum_lp_ref, *,
                       beta, small_value, batch, num_classes,
                       tile_b, tile_c, mask_rows, mask_cols):
    i = pl.program_id(0)                 # batch-tile index ("parallel")
    j = pl.program_id(1)                 # class-tile index ("arbitrary" reduction)

    @pl.when(j == 0)
    def _init():
        sum_p_ref[...] = jnp.zeros_like(sum_p_ref)
        sum_l_ref[...] = jnp.zeros_like(sum_l_ref)
        sum_lp_ref[...] = jnp.zeros_like(sum_lp_ref)

    logits = logits_ref[...].astype(jnp.float32)   # (TB, TC)
    labels = labels_ref[...].astype(jnp.float32)

    p = jax.nn.sigmoid(logits)                     # EUP exp, HBM-bound anyway
    l = labels
    if mask_cols:
        col = jax.lax.broadcasted_iota(jnp.int32, (tile_b, tile_c), 1) + j * tile_c
        cmask = col < num_classes
        p = jnp.where(cmask, p, 0.0)
        l = jnp.where(cmask, l, 0.0)

    # Row partials over the class (lane) axis, accumulated across class tiles.
    sum_p_ref[...] += jnp.sum(p, axis=1, keepdims=True)        # (TB, 1)
    sum_l_ref[...] += jnp.sum(l, axis=1, keepdims=True)
    sum_lp_ref[...] += jnp.sum(l * p, axis=1, keepdims=True)

    @pl.when(j == pl.num_programs(1) - 1)
    def _finalize():
        num_pos = sum_p_ref[...] + small_value
        num_pos_hat = sum_l_ref[...] + small_value
        tp = sum_lp_ref[...]
        precise = tp / num_pos
        recall = tp / num_pos_hat
        b2 = beta * beta
        fs = (1.0 + b2) * precise * recall / (b2 * precise + recall + small_value)
        if mask_rows:
            row = jax.lax.broadcasted_iota(jnp.int32, (tile_b, 1), 0) + i * tile_b
            fs = jnp.where(row < batch, fs, 0.0)   # select, so garbage rows -> 0
        out_ref[...] = fs                          # per-row fs for this batch tile


def fbeta_loss(logits, labels, beta=1.0, small_value=1e-6):
    """Pallas TPU implementation of FbetaLoss.forward.

    Accepts f32 or bf16 logits/labels (bf16 halves HBM traffic; math is f32
    inside the kernel). Non-float labels are cast to f32 in the wrapper.
    """
    assert logits.shape == labels.shape and logits.ndim == 2
    B, C = logits.shape
    if not jnp.issubdtype(labels.dtype, jnp.floating):
        # TODO(synk): keep int8/bool labels in HBM and upcast in-kernel once
        # narrow-dtype block tiling is wired through; for now cast outside.
        labels = labels.astype(jnp.float32)

    pair_bytes = logits.dtype.itemsize + labels.dtype.itemsize
    tb, tc = _pick_tiles(B, C, pair_bytes)
    nb = pl.cdiv(B, tb)
    nc = pl.cdiv(C, tc)

    kernel = functools.partial(
        _fbeta_loss_kernel,
        beta=float(beta),
        small_value=float(small_value),
        batch=int(B),
        num_classes=int(C),
        tile_b=tb,
        tile_c=tc,
        mask_rows=(B % tb != 0),
        mask_cols=(C % tc != 0),
    )

    cost = pl.CostEstimate(
        flops=6 * B * C,
        transcendentals=B * C,
        bytes_accessed=B * C * pair_bytes + nb * tb * 4,
    )

    partials = pl.pallas_call(
        kernel,
        out_shape=jax.ShapeDtypeStruct((nb * tb, 1), jnp.float32),
        grid=(nb, nc),
        in_specs=[
            pl.BlockSpec((tb, tc), lambda i, j: (i, j)),
            pl.BlockSpec((tb, tc), lambda i, j: (i, j)),
        ],
        out_specs=pl.BlockSpec((tb, 1), lambda i, j: (i, 0)),
        scratch_shapes=[pltpu.VMEM((tb, 1), jnp.float32)] * 3,
        compiler_params=pltpu.CompilerParams(
            dimension_semantics=("parallel", "arbitrary")),
        cost_estimate=cost,
    )(logits, labels)

    # Cheap scalar finish in the wrapper (padded rows were masked to 0).
    return 1.0 - jnp.sum(partials) / B


def fbeta_loss_ref(logits, labels, beta=1.0, small_value=1e-6):
    """Pure-JAX reference mirroring the PyTorch module."""
    B = logits.shape[0]
    p = jax.nn.sigmoid(logits.astype(jnp.float32))
    l = labels.astype(jnp.float32)
    num_pos = jnp.sum(p, axis=1) + small_value
    num_pos_hat = jnp.sum(l, axis=1) + small_value
    tp = jnp.sum(l * p, axis=1)
    precise = tp / num_pos
    recall = tp / num_pos_hat
    b2 = beta * beta
    fs = (1 + b2) * precise * recall / (b2 * precise + recall + small_value)
    return 1.0 - jnp.sum(fs) / B


if __name__ == "__main__":
    key = jax.random.PRNGKey(0)
    k1, k2, k3, k4 = jax.random.split(key, 4)

    # Test 1: clean TPU-friendly shapes (batch=8, classes=128).
    B, C = 8, 128
    logits = jax.random.normal(k1, (B, C), dtype=jnp.float32)
    labels = (jax.random.uniform(k2, (B, C)) > 0.5).astype(jnp.float32)
    out = jax.block_until_ready(fbeta_loss(logits, labels, beta=1.0))
    ref = fbeta_loss_ref(logits, labels, beta=1.0)
    assert jnp.allclose(out, ref, atol=1e-5, rtol=1e-5), (out, ref)

    # Test 2: ragged shapes exercising the row/column masking paths.
    B2, C2 = 10, 200
    logits2 = jax.random.normal(k3, (B2, C2), dtype=jnp.float32)
    labels2 = (jax.random.uniform(k4, (B2, C2)) > 0.5).astype(jnp.float32)
    out2 = jax.block_until_ready(fbeta_loss(logits2, labels2, beta=2.0))
    ref2 = fbeta_loss_ref(logits2, labels2, beta=2.0)
    assert jnp.allclose(out2, ref2, atol=1e-5, rtol=1e-5), (out2, ref2)

    print("KERNEL_OK")
</pallas_src>

<mosaic_0001>
module attributes {stable_mosaic.version = 11 : i64} {
  func.func @_fbeta_loss_kernel(%arg0: i32, %arg1: i32, %arg2: memref<8x128xf32, #tpu.memory_space<vmem>>, %arg3: memref<8x128xf32, #tpu.memory_space<vmem>>, %arg4: memref<8x1xf32, #tpu.memory_space<vmem>>, %arg5: memref<8x1xf32, #tpu.memory_space<vmem>>, %arg6: memref<8x1xf32, #tpu.memory_space<vmem>>, %arg7: memref<8x1xf32, #tpu.memory_space<vmem>>) attributes {dimension_semantics = [#tpu.dimension_semantics<parallel>, #tpu.dimension_semantics<arbitrary>], iteration_bounds = array<i64: 1, 1>, scalar_prefetch = 0 : i64, scratch_operands = 3 : i64, tpu.core_type = #tpu.core_type<tc>, window_params = [{transform_indices = @transform_0, window_bounds = array<i64: 8, 128>}, {transform_indices = @transform_1, window_bounds = array<i64: 8, 128>}, {transform_indices = @transform_2, window_bounds = array<i64: 8, 1>}]} {
    %c0_i32 = arith.constant 0 : i32
    %0 = arith.cmpi eq, %arg1, %c0_i32 : i32
    %1 = arith.extui %0 : i1 to i32
    %c0_i32_0 = arith.constant 0 : i32
    %2 = arith.cmpi ne, %1, %c0_i32_0 : i32
    scf.if %2 {
      %cst_21 = arith.constant 0.000000e+00 : f32
      %29 = vector.broadcast %cst_21 : f32 to vector<8x1xf32>
      %c0_22 = arith.constant 0 : index
      %c0_23 = arith.constant 0 : index
      %30 = vector.load %arg5[%c0_22, %c0_23] : memref<8x1xf32, #tpu.memory_space<vmem>>, vector<8x1xf32>
      tpu.vector_store %arg5[%c0_22, %c0_23], %29 {strides = array<i32>} : memref<8x1xf32, #tpu.memory_space<vmem>>, vector<8x1xf32>,
      %cst_24 = arith.constant 0.000000e+00 : f32
      %31 = vector.broadcast %cst_24 : f32 to vector<8x1xf32>
      %c0_25 = arith.constant 0 : index
      %c0_26 = arith.constant 0 : index
      %32 = vector.load %arg6[%c0_25, %c0_26] : memref<8x1xf32, #tpu.memory_space<vmem>>, vector<8x1xf32>
      tpu.vector_store %arg6[%c0_25, %c0_26], %31 {strides = array<i32>} : memref<8x1xf32, #tpu.memory_space<vmem>>, vector<8x1xf32>,
      %cst_27 = arith.constant 0.000000e+00 : f32
      %33 = vector.broadcast %cst_27 : f32 to vector<8x1xf32>
      %c0_28 = arith.constant 0 : index
      %c0_29 = arith.constant 0 : index
      %34 = vector.load %arg7[%c0_28, %c0_29] : memref<8x1xf32, #tpu.memory_space<vmem>>, vector<8x1xf32>
      tpu.vector_store %arg7[%c0_28, %c0_29], %33 {strides = array<i32>} : memref<8x1xf32, #tpu.memory_space<vmem>>, vector<8x1xf32>,
    } else {
    }
    %c0 = arith.constant 0 : index
    %c0_1 = arith.constant 0 : index
    %3 = vector.load %arg2[%c0, %c0_1] : memref<8x128xf32, #tpu.memory_space<vmem>>, vector<8x128xf32>
    %c0_2 = arith.constant 0 : index
    %c0_3 = arith.constant 0 : index
    %4 = vector.load %arg3[%c0_2, %c0_3] : memref<8x128xf32, #tpu.memory_space<vmem>>, vector<8x128xf32>
    %5 = arith.negf %3 : vector<8x128xf32>
    %6 = math.exp %5 : vector<8x128xf32>
    %cst = arith.constant 1.000000e+00 : f32
    %7 = vector.broadcast %cst : f32 to vector<8x128xf32>
    %8 = arith.addf %7, %6 : vector<8x128xf32>
    %9 = arith.divf %7, %8 : vector<8x128xf32>
    %c0_4 = arith.constant 0 : index
    %c0_5 = arith.constant 0 : index
    %10 = vector.load %arg5[%c0_4, %c0_5] : memref<8x1xf32, #tpu.memory_space<vmem>>, vector<8x1xf32>
    %cst_6 = arith.constant dense<0.000000e+00> : vector<8xf32>
    %11 = vector.multi_reduction <add>, %9, %cst_6 [1] : vector<8x128xf32> to vector<8xf32>
    %12 = vector.shape_cast %11 : vector<8xf32> to vector<8x1xf32>
    %13 = arith.addf %10, %12 : vector<8x1xf32>
    %c0_7 = arith.constant 0 : index
    %c0_8 = arith.constant 0 : index
    %14 = vector.load %arg5[%c0_7, %c0_8] : memref<8x1xf32, #tpu.memory_space<vmem>>, vector<8x1xf32>
    tpu.vector_store %arg5[%c0_7, %c0_8], %13 {strides = array<i32>} : memref<8x1xf32, #tpu.memory_space<vmem>>, vector<8x1xf32>,
    %c0_9 = arith.constant 0 : index
    %c0_10 = arith.constant 0 : index
    %15 = vector.load %arg6[%c0_9, %c0_10] : memref<8x1xf32, #tpu.memory_space<vmem>>, vector<8x1xf32>
    %cst_11 = arith.constant dense<0.000000e+00> : vector<8xf32>
    %16 = vector.multi_reduction <add>, %4, %cst_11 [1] : vector<8x128xf32> to vector<8xf32>
    %17 = vector.shape_cast %16 : vector<8xf32> to vector<8x1xf32>
    %18 = arith.addf %15, %17 : vector<8x1xf32>
    %c0_12 = arith.constant 0 : index
    %c0_13 = arith.constant 0 : index
    %19 = vector.load %arg6[%c0_12, %c0_13] : memref<8x1xf32, #tpu.memory_space<vmem>>, vector<8x1xf32>
    tpu.vector_store %arg6[%c0_12, %c0_13], %18 {strides = array<i32>} : memref<8x1xf32, #tpu.memory_space<vmem>>, vector<8x1xf32>,
    %c0_14 = arith.constant 0 : index
    %c0_15 = arith.constant 0 : index
    %20 = vector.load %arg7[%c0_14, %c0_15] : memref<8x1xf32, #tpu.memory_space<vmem>>, vector<8x1xf32>
    %21 = arith.mulf %4, %9 : vector<8x128xf32>
    %cst_16 = arith.constant dense<0.000000e+00> : vector<8xf32>
    %22 = vector.multi_reduction <add>, %21, %cst_16 [1] : vector<8x128xf32> to vector<8xf32>
    %23 = vector.shape_cast %22 : vector<8xf32> to vector<8x1xf32>
    %24 = arith.addf %20, %23 : vector<8x1xf32>
    %c0_17 = arith.constant 0 : index
    %c0_18 = arith.constant 0 : index
    %25 = vector.load %arg7[%c0_17, %c0_18] : memref<8x1xf32, #tpu.memory_space<vmem>>, vector<8x1xf32>
    tpu.vector_store %arg7[%c0_17, %c0_18], %24 {strides = array<i32>} : memref<8x1xf32, #tpu.memory_space<vmem>>, vector<8x1xf32>,
    %c0_i32_19 = arith.constant 0 : i32
    %26 = arith.cmpi eq, %arg1, %c0_i32_19 : i32
    %27 = arith.extui %26 : i1 to i32
    %c0_i32_20 = arith.constant 0 : i32
    %28 = arith.cmpi ne, %27, %c0_i32_20 : i32
    scf.if %28 {
      %c0_21 = arith.constant 0 : index
      %c0_22 = arith.constant 0 : index
      %29 = vector.load %arg5[%c0_21, %c0_22] : memref<8x1xf32, #tpu.memory_space<vmem>>, vector<8x1xf32>
      %cst_23 = arith.constant 9.99999997E-7 : f32
      %30 = vector.broadcast %cst_23 : f32 to vector<8x1xf32>
      %31 = arith.addf %29, %30 : vector<8x1xf32>
      %c0_24 = arith.constant 0 : index
      %c0_25 = arith.constant 0 : index
      %32 = vector.load %arg6[%c0_24, %c0_25] : memref<8x1xf32, #tpu.memory_space<vmem>>, vector<8x1xf32>
      %cst_26 = arith.constant 9.99999997E-7 : f32
      %33 = vector.broadcast %cst_26 : f32 to vector<8x1xf32>
      %34 = arith.addf %32, %33 : vector<8x1xf32>
      %c0_27 = arith.constant 0 : index
      %c0_28 = arith.constant 0 : index
      %35 = vector.load %arg7[%c0_27, %c0_28] : memref<8x1xf32, #tpu.memory_space<vmem>>, vector<8x1xf32>
      %36 = arith.divf %35, %31 : vector<8x1xf32>
      %37 = arith.divf %35, %34 : vector<8x1xf32>
      %cst_29 = arith.constant 2.000000e+00 : f32
      %38 = vector.broadcast %cst_29 : f32 to vector<8x1xf32>
      %39 = arith.mulf %38, %36 : vector<8x1xf32>
      %40 = arith.mulf %39, %37 : vector<8x1xf32>
      %cst_30 = arith.constant 1.000000e+00 : f32
      %41 = vector.broadcast %cst_30 : f32 to vector<8x1xf32>
      %42 = arith.mulf %41, %36 : vector<8x1xf32>
      %43 = arith.addf %42, %37 : vector<8x1xf32>
      %cst_31 = arith.constant 9.99999997E-7 : f32
      %44 = vector.broadcast %cst_31 : f32 to vector<8x1xf32>
      %45 = arith.addf %43, %44 : vector<8x1xf32>
      %46 = arith.divf %40, %45 : vector<8x1xf32>
      %c0_32 = arith.constant 0 : index
      %c0_33 = arith.constant 0 : index
      %47 = vector.load %arg4[%c0_32, %c0_33] : memref<8x1xf32, #tpu.memory_space<vmem>>, vector<8x1xf32>
      tpu.vector_store %arg4[%c0_32, %c0_33], %46 {strides = array<i32>} : memref<8x1xf32, #tpu.memory_space<vmem>>, vector<8x1xf32>,
    } else {
    }
    return
  }
  func.func @transform_0(%arg0: i32, %arg1: i32) -> (i32, i32) {
    %c0_i32 = arith.constant 0 : i32
    return %arg0, %arg1 : i32, i32
  }
  func.func @transform_1(%arg0: i32, %arg1: i32) -> (i32, i32) {
    %c0_i32 = arith.constant 0 : i32
    return %arg0, %arg1 : i32, i32
  }
  func.func @transform_2(%arg0: i32, %arg1: i32) -> (i32, i32) {
    %c0_i32 = arith.constant 0 : i32
    %c0_i32_0 = arith.constant 0 : i32
    return %arg0, %c0_i32 : i32, i32
  }
}

</mosaic_0001>

<bundles_post_ra>
// kernel: tpu_custom_call.1
= control target key start
LH: loop header
LB: loop body
LE: loop exit
PB: predicated region body
PF: predicated region fallthrough
CT: control target
= control target key end

     0   :  { %7 = vsyncpa [#allocation6], 0  ;;  %s207_s0 = inlined_call_operand.hbm [shape: f32[8,128], index: 0, kind: input, shape index: {}]   ;;  %s208_s1 = inlined_call_operand.hbm [shape: f32[8,128], index: 1, kind: input, shape index: {}]   ;;  %s209_s2 = inlined_call_operand.vmem [shape: f32[8,1], index: 2, kind: output, shape index: {}]  }
   0x1   :  { %8 = vsyncpa [#allocation8], 0  ;;  %s155_s9 = smov [#allocation5]   ;;  %s156_s11 = smov [#allocation7]  }
   0x2   :  { %s15_s10 = sshll.u32 %s155_s9, 4  ;;  %s25_s12 = sshll.u32 %s156_s11, 4  ;;  %s16_s10 = int_to_ptr.vmem [resolvable:$true] %s15_s10  ;;  %s26_s12 = int_to_ptr.vmem [resolvable:$true] %s25_s12 }
   0x3   :  { %s107_s15 = scalar_lea.hbm %s207_s0, 128 }
   0x4   :  { %p108_p0 = scmp.ne.s32.totalorder %s207_s0, %s107_s15  ;;  %p111_p1 = scmp.lt.u32.totalorder %s107_s15, %s207_s0 }
   0x6   :  { %p113_p2 = pnand %p111_p1, %p108_p0 }
   0x8   :  { %116 = shalt.err (!%p113_p2)
}
   0x9   :  { %s117_s20 = scalar_lea.vmem %s16_s10, 128  ;;  %p122_p4 = scmp.lt.s32.totalorder %s16_s10, %s16_s10 }
   0xa   :  { %p118_p3 = scmp.ne.s32.totalorder %s16_s10, %s117_s20  ;;  %p123_p5 = scmp.lt.s32.totalorder %s117_s20, %s117_s20 }
   0xc   :  { %p124_p6 = por %p123_p5, %p122_p4 }
   0xe   :  { %p125_p7 = pnand %p124_p6, %p118_p3 }
  0x10   :  { %128 = shalt.err (!%p125_p7)
}
  0x11   :  { %18 = dma.hbm_to_vmem [thread:$0]  %s207_s0, 128, %s16_s10, [#allocation6]  }
  0x12   :  { %s129_s25 = scalar_lea.hbm %s208_s1, 128 }
  0x13   :  { %p130_p8 = scmp.ne.s32.totalorder %s208_s1, %s129_s25  ;;  %p133_p9 = scmp.lt.u32.totalorder %s129_s25, %s208_s1 }
  0x15   :  { %p135_p10 = pnand %p133_p9, %p130_p8 }
  0x17   :  { %138 = shalt.err (!%p135_p10)
}
  0x18   :  { %s139_s30 = scalar_lea.vmem %s26_s12, 128  ;;  %p144_p12 = scmp.lt.s32.totalorder %s26_s12, %s26_s12 }
  0x19   :  { %p140_p11 = scmp.ne.s32.totalorder %s26_s12, %s139_s30  ;;  %p145_p13 = scmp.lt.s32.totalorder %s139_s30, %s139_s30 }
  0x1b   :  { %p146_p0 = por %p145_p13, %p144_p12 }
  0x1d   :  { %p147_p1 = pnand %p146_p0, %p140_p11 }
  0x1f   :  { %150 = shalt.err (!%p147_p1)
}
  0x20   :  { %28 = dma.hbm_to_vmem [thread:$0]  %s208_s1, 128, %s26_s12, [#allocation8]  }
  0x21   :  { %151 = dma.done.wait [#allocation6], 128  }
  0x22   :  { %152 = vsyncadd [#allocation6], 4294967168 }
  0x23   :  { %153 = dma.done.wait [#allocation8], 128  }
  0x24   :  { %154 = vsyncadd [#allocation8], 4294967168  ;;  %vm39_vm0 = vcmask 7168   ;;  %v157_v0 = vmov 0.0   ;;  %v43_v1 = vld [vmem:[#allocation5] sm:$0xff]  ;;  %v44_v6 = vld [vmem:[#allocation7] sm:$0xff] }
  0x25   :  { %40 = vst.msk [vmem:[#allocation2] sm:$0xff] %vm39_vm0, %v157_v0  ;;  %41 = vst.msk [vmem:[#allocation3] sm:$0xff] %vm39_vm0, %v157_v0  ;;  %v93_v2 = vmul.f32 -1.442695, %v43_v1 }
  0x26   :  { %42 = vst.msk [vmem:[#allocation4] sm:$0xff] %vm39_vm0, %v157_v0 }
  0x27   :  { %97 = vpow2.f32 %v93_v2 }
  0x2c   :  { %v51_v8 = vld [vmem:[#allocation2] sm:$0xff]  ;;  %v57_v12 = vld [vmem:[#allocation3] sm:$0xff] }
  0x2d   :  { %v62_v10 = vld [vmem:[#allocation4] sm:$0xff] }
  0x31   :  { %v98_v3 = vpop.eup %97 }
  0x32   :  { %v48_v4 = vadd.f32 1.0, %v98_v3 }
  0x34   :  { %99 = vrcp.f32 %v48_v4 }
  0x3e   :  { %v100_v5 = vpop.eup %99 }
  0x3f   :  { %52 = vadd.xlane.f32.xlu0 %v100_v5  ;;  %v63_v7 = vmul.f32 %v100_v5, %v44_v6 }
  0x41   :  { %64 = vadd.xlane.f32.xlu1 %v63_v7 }
  0x43   :  { %58 = vadd.xlane.f32.xlu0 %v44_v6 }
  0xcc   :  { %v53_v9 = vpop.xlane.xlu0 %52 }
  0xcd   :  { %v54_v11 = vadd.f32 %v53_v9, %v51_v8 }
  0xce   :  { %v65_v13 = vpop.xlane.xlu1 %64 }
  0xcf   :  { %56 = vst.msk [vmem:[#allocation2] sm:$0xff] %vm39_vm0, %v54_v11  ;;  %v66_v14 = vadd.f32 %v65_v13, %v62_v10 }
  0xd0   :  { %v59_v15 = vpop.xlane.xlu0 %58 }
  0xd1   :  { %v60_v16 = vadd.f32 %v59_v15, %v57_v12  ;;  %67 = vst.msk [vmem:[#allocation4] sm:$0xff] %vm39_vm0, %v66_v14 }
  0xd3   :  { %61 = vst.msk [vmem:[#allocation3] sm:$0xff] %vm39_vm0, %v60_v16 }
  0xd6   :  { %v71_v17 = vld [vmem:[#allocation2] sm:$0xff] }
  0xd7   :  { %v72_v18 = vadd.f32 1e-06, %v71_v17 }
  0xd8   :  { %v75_v22 = vld [vmem:[#allocation4] sm:$0xff] }
  0xd9   :  { %101 = vrcp.f32 %v72_v18 }
  0xda   :  { %v73_v19 = vld [vmem:[#allocation3] sm:$0xff] }
  0xdb   :  { %v74_v20 = vadd.f32 1e-06, %v73_v19 }
  0xdd   :  { %103 = vrcp.f32 %v74_v20 }
  0xe3   :  { %v102_v21 = vpop.eup %101 }
  0xe4   :  { %v77_v24 = vmul.f32 %v102_v21, %v75_v22 }
  0xe6   :  { %v80_v28 = vmul.f32 2.0, %v77_v24 }
  0xe7   :  { %v104_v23 = vpop.eup %103 }
  0xe8   :  { %v79_v25 = vmul.f32 %v104_v23, %v75_v22 }
  0xea   :  { %v82_v26 = vadd.f32 %v79_v25, %v77_v24  ;;  %v81_v29 = vmul.f32 %v80_v28, %v79_v25 }
  0xec   :  { %v83_v27 = vadd.f32 1e-06, %v82_v26 }
  0xee   :  { %105 = vrcp.f32 %v83_v27 }
  0xf8   :  { %v106_v30 = vpop.eup %105 }
  0xf9   :  { %v85_v31 = vmul.f32 %v106_v30, %v81_v29 }
  0xfb   :  { %86 = vst.msk [vmem:[%s209_s2] sm:$0xff] %vm39_vm0, %v85_v31 }
  0xfc   :  { %91 = vsyncpa [#allocation6], 1 }
  0xfd   :  { %92 = vsyncpa [#allocation8], 1 }

</bundles_post_ra>
